<compile_context>
chip_gen: v7x
topology: tpu7x:2x2x1
jax: 0.10.0
libtpu: 0.0.40
codegen_flags: <defaults>
</compile_context>

<pallas_src>
import random
from functools import partial

import jax
import jax.numpy as jnp
import numpy as np
from jax.experimental import pallas as pl
from jax.experimental.pallas import tpu as pltpu


def _round_up(x, m):
    return (x + m - 1) // m * m


def _make_chain_kernel(kl):
    """Kernel for grid=(Bx, L//kl).

    attn_ref: (kl, H, N, N) block = kl consecutive layers (ascending layer index) of one
    batch element; the layer-block grid axis is walked in reverse.
    r_ref (VMEM scratch, (H, 1, N) f32) carries the per-head CLS-row chain across grid
    steps; out_ref (1, 1, N-1) is written exactly once per batch element (max over heads,
    lane-dense single store).
    """

    def kernel(attn_ref, out_ref, r_ref):
        k = pl.program_id(1)
        last = pl.num_programs(1) - 1

        def matmul_step(i):
            # r <- r @ A[layer i of this block]; operands stay in the input dtype (native
            # bf16 MXU path when the producer emits bf16), accumulation is f32.
            a = attn_ref[i]                                   # (H, N, N), input dtype
            r_ref[...] = jnp.einsum(
                "hxn,hnm->hxm",
                r_ref[...].astype(a.dtype), a,
                preferred_element_type=jnp.float32,
            )

        @pl.when(k == 0)
        def _():
            # Start of the chain: per-head CLS row of the *last* layer (highest index in
            # this block).  Only this (H, 1, N) slice is upcast — no full-block f32 copy.
            r_ref[...] = attn_ref[kl - 1, :, 0:1, :].astype(jnp.float32)
            for i in range(kl - 2, -1, -1):                   # remaining layers, descending
                matmul_step(i)

        @pl.when(k > 0)
        def _():
            for i in range(kl - 1, -1, -1):                   # all kl layers, descending
                matmul_step(i)

        @pl.when(k == last)
        def _():
            # Head max + CLS->image-token slice; single lane-dense write per batch element.
            out_ref[...] = jnp.max(r_ref[...][:, :, 1:], axis=0, keepdims=True)

    return kernel


def chain_headmax(attn_stack, *, kl_max=4, vmem_budget_bytes=24 * 1024 * 1024):
    """attn_stack: (L, Bx, H, N, N) float (any float dtype; no wrapper convert pass)
    -> (Bx, N-1) float32.

    Computes max_h (A[L-1] @ ... @ A[0])[b, h, 0, 1:] via a per-head row-vector chain,
    processing `kl` layers per grid step to amortize fixed per-step overhead.
    """
    L, Bx, H, N, _ = attn_stack.shape

    # --- layer-blocking factor: largest divisor of L that is <= kl_max and whose
    # double-buffered (tile-padded) input block fits the per-generation-safe VMEM budget.
    itemsize = jnp.dtype(attn_stack.dtype).itemsize
    sublane = {4: 8, 2: 16, 1: 32}.get(itemsize, 8)
    per_layer_block = H * _round_up(N, sublane) * _round_up(N, 128) * itemsize
    kl = 1
    for d in range(1, min(L, kl_max) + 1):
        if L % d == 0 and 2 * d * per_layer_block <= vmem_budget_bytes:
            kl = d
    nkb = L // kl

    # Scoped-VMEM estimate: double-buffered input block + f32 carry + output block.
    need = (2 * kl * per_layer_block
            + H * 8 * _round_up(N, 128) * 4
            + 2 * 8 * _round_up(N - 1, 128) * 4)
    vmem_limit = None
    if need > 28 * 1024 * 1024:   # only raise above the default scoped limit, with headroom
        vmem_limit = min(int(need * 1.25) + (4 << 20), 48 << 20)

    out = pl.pallas_call(
        _make_chain_kernel(kl),
        out_shape=jax.ShapeDtypeStruct((Bx, 1, N - 1), jnp.float32),
        grid_spec=pltpu.PrefetchScalarGridSpec(
            num_scalar_prefetch=0,
            grid=(Bx, nkb),
            in_specs=[
                # One (kl, H, N, N) block per (batch, layer-block); the layer-block axis
                # is walked in reverse so the chain starts from A[L-1].
                pl.BlockSpec(
                    (kl, None, H, N, N),
                    lambda b, k: (nkb - 1 - k, b, 0, 0, 0),
                )
            ],
            out_specs=pl.BlockSpec((1, 1, N - 1), lambda b, k: (b, 0, 0)),
            scratch_shapes=[pltpu.VMEM((H, 1, N), jnp.float32)],
        ),
        compiler_params=pltpu.CompilerParams(
            # Batch axis parallel -> shards across v7x's two TensorCores (keep Bx even);
            # the layer-block axis is the resident-accumulator reduction axis.
            dimension_semantics=("parallel", "arbitrary"),
            vmem_limit_bytes=vmem_limit,
        ),
    )(attn_stack)
    return out[:, 0, :]


def _chain_headmax_xla(attn_stack):
    """Plain-XLA row-vector chain (used for the tiny (V+1)x(V+1) global path)."""
    a = attn_stack.astype(jnp.float32)
    L = a.shape[0]
    r = a[L - 1, :, :, 0, :]                       # (B, H, M) — CLS row of last layer
    for i in range(L - 2, -1, -1):
        r = jnp.einsum("bhn,bhnm->bhm", r, a[i])
    return jnp.max(r[..., 1:], axis=1)             # (B, M-1)


def _ref_chain_headmax(attn_stack):
    """Pure-JAX full-matrix reference (matches the PyTorch Part_Attention math)."""
    m = attn_stack[0]
    for i in range(1, attn_stack.shape[0]):
        m = jnp.matmul(attn_stack[i], m)
    return jnp.max(m[:, :, 0, 1:], axis=1)


def _ref_chain_headmax_kernelmath(attn_stack):
    """Pure-JAX reference mirroring the kernel's math exactly (row-vector chain, matmul
    operands in the input dtype, f32 accumulation)."""
    a = attn_stack
    L = a.shape[0]
    r = a[L - 1][:, :, 0:1, :].astype(jnp.float32)            # (B, H, 1, N)
    for i in range(L - 2, -1, -1):
        r = jnp.einsum("bhxn,bhnm->bhxm", r.astype(a.dtype), a[i],
                       preferred_element_type=jnp.float32)
    return jnp.max(r[:, :, 0, 1:], axis=1)


@partial(jax.jit, static_argnums=(2,))
def _device_hot_path(views_attn_stack, global_attn_stack, img_tokens):
    """Single fused device dispatch: Pallas views chain + XLA global chain + softmax/round."""
    last_map = chain_headmax(views_attn_stack)               # Pallas: (B*V, N-1)
    global_row = _chain_headmax_xla(global_attn_stack)       # tiny (M=V+1): plain XLA, (B, V)
    glob = jnp.round(jax.nn.softmax(global_row, axis=-1) * img_tokens).astype(jnp.int32)
    return last_map, glob


def part_attention_forward(views_attn_stack, global_attn_stack, num_views, img_tokens):
    """Reproduces Part_Attention.forward.

    views_attn_stack : (L,  B*V, H,  N, N)   with N = img_tokens + 1
    global_attn_stack: (Lg, B,   Hg, M, M)   with M = num_views + 1
    Returns nested list key_tokens_idx[b][v] of selected token indices.
    """
    # One device dispatch for both results, one host round-trip to fetch them together.
    last_map_dev, glob_dev = _device_hot_path(views_attn_stack, global_attn_stack, img_tokens)
    last_map_np, g = jax.device_get((last_map_dev, glob_dev))

    Bv = last_map_np.shape[0]
    B = Bv // num_views
    last_map = np.asarray(last_map_np).reshape(B, num_views, -1)   # (B, V, N-1)
    g = np.asarray(g).copy()                                       # (B, V) int32

    # TODO(synk): token-budget fixup uses host-side random.randint (as in PyTorch); kept on host.
    totals = g.sum(axis=1)
    for k in range(B):
        if totals[k] > img_tokens:
            r = int(totals[k] - img_tokens)
            idx = random.randint(0, num_views - 1)
            g[k, idx] -= r
        elif totals[k] < img_tokens:
            r = int(img_tokens - totals[k])
            idx = random.randint(0, num_views - 1)
            g[k, idx] += r

    # TODO(synk): ragged per-view top-k index lists have variable length -> host-side argsort slice.
    key_tokens_idx = []
    for i in range(B):
        idx = []
        for j in range(num_views):
            kcount = int(g[i, j])
            order = np.argsort(last_map[i, j])
            idx.append(order[-kcount:])       # same slicing semantics as the PyTorch code
        key_tokens_idx.append(idx)
    return key_tokens_idx


if __name__ == "__main__":
    random.seed(0)
    key = jax.random.PRNGKey(0)

    # Small, self-consistent shapes.
    B = 2            # batch
    V = 4            # num_views
    H = 4            # heads in per-view attention
    Hg = 4           # heads in global (cross-view) attention
    img_tokens = 16  # image tokens per view
    N = img_tokens + 1   # view sequence length (CLS + image tokens)
    M = V + 1            # global sequence length (CLS + views)
    L, Lg = 6, 2         # number of attention layers in each list (L=6 -> KL=3, 2 layer-blocks)
    Bv = B * V           # even -> splits cleanly across v7x's two TensorCores

    k1, k2 = jax.random.split(key)
    # Deterministic synthetic attention maps (row-stochastic via softmax).
    views_attn_f32 = jax.nn.softmax(
        jax.random.normal(k1, (L, Bv, H, N, N), dtype=jnp.float32), axis=-1
    )
    # "Producer emits bf16": the attention-softmax output is materialized once in bf16,
    # so there is no standalone f32->bf16 convert pass on the hot path.
    views_attn_bf16 = views_attn_f32.astype(jnp.bfloat16)
    global_attn = jax.nn.softmax(
        jax.random.normal(k2, (Lg, B, Hg, M, M), dtype=jnp.float32), axis=-1
    )

    # --- correctness: bf16-input path (native bf16 MXU operands, f32 accumulation) ---
    got_bf16 = jax.block_until_ready(chain_headmax(views_attn_bf16))
    ref_kernelmath = _ref_chain_headmax_kernelmath(views_attn_bf16)
    np.testing.assert_allclose(np.asarray(got_bf16), np.asarray(ref_kernelmath),
                               rtol=2e-3, atol=1e-5)
    ref_f32 = _ref_chain_headmax(views_attn_f32)
    np.testing.assert_allclose(np.asarray(got_bf16), np.asarray(ref_f32),
                               rtol=5e-2, atol=5e-3)

    # --- correctness: f32-input path (no wrapper cast; kernel reads f32 directly) ---
    got_f32 = jax.block_until_ready(chain_headmax(views_attn_f32))
    np.testing.assert_allclose(np.asarray(got_f32), np.asarray(ref_f32),
                               rtol=2e-3, atol=2e-5)

    # --- layer blocking (KL>1) agrees with the unblocked kernel (KL=1) ---
    got_kl1 = jax.block_until_ready(chain_headmax(views_attn_bf16, kl_max=1))
    np.testing.assert_allclose(np.asarray(got_bf16), np.asarray(got_kl1),
                               rtol=1e-5, atol=1e-6)

    key_tokens_idx = part_attention_forward(views_attn_bf16, global_attn, V, img_tokens)
    # Sanity: per-batch selected token counts sum to img_tokens.
    for per_batch in key_tokens_idx:
        assert sum(len(v) for v in per_batch) == img_tokens

    print("KERNEL_OK")
</pallas_src>

<mosaic_0001>
module attributes {stable_mosaic.version = 11 : i64} {
  func.func @kernel(%arg0: i32, %arg1: i32, %arg2: memref<3x1x4x17x17xbf16, #tpu.memory_space<vmem>>, %arg3: memref<1x1x16xf32, #tpu.memory_space<vmem>>, %arg4: memref<4x1x17xf32, #tpu.memory_space<vmem>>) attributes {dimension_semantics = [#tpu.dimension_semantics<parallel>, #tpu.dimension_semantics<arbitrary>], iteration_bounds = array<i64: 8, 2>, scalar_prefetch = 0 : i64, scratch_operands = 1 : i64, tpu.core_type = #tpu.core_type<tc>, window_params = [{transform_indices = @transform_0, window_bounds = array<i64: 3, 1, 4, 17, 17>}, {transform_indices = @transform_1, window_bounds = array<i64: 1, 1, 16>}]} {
    %c0_i32 = arith.constant 0 : i32
    %0 = arith.cmpi eq, %arg1, %c0_i32 : i32
    %1 = arith.extui %0 : i1 to i32
    %c0_i32_0 = arith.constant 0 : i32
    %2 = arith.cmpi ne, %1, %c0_i32_0 : i32
    scf.if %2 {
      %c2 = arith.constant 2 : index
      %c0 = arith.constant 0 : index
      %c0_4 = arith.constant 0 : index
      %c0_5 = arith.constant 0 : index
      %c0_6 = arith.constant 0 : index
      %9 = vector.load %arg2[%c2, %c0, %c0_4, %c0_5, %c0_6] : memref<3x1x4x17x17xbf16, #tpu.memory_space<vmem>>, vector<1x1x4x1x17xbf16>
      %10 = vector.shape_cast %9 : vector<1x1x4x1x17xbf16> to vector<4x1x17xbf16>
      %11 = arith.extf %10 : vector<4x1x17xbf16> to vector<4x1x17xf32>
      %c0_7 = arith.constant 0 : index
      %c0_8 = arith.constant 0 : index
      %c0_9 = arith.constant 0 : index
      %12 = vector.load %arg4[%c0_7, %c0_8, %c0_9] : memref<4x1x17xf32, #tpu.memory_space<vmem>>, vector<4x1x17xf32>
      tpu.vector_store %arg4[%c0_7, %c0_8, %c0_9], %11 {strides = array<i32>} : memref<4x1x17xf32, #tpu.memory_space<vmem>>, vector<4x1x17xf32>,
      %c1 = arith.constant 1 : index
      %c0_10 = arith.constant 0 : index
      %c0_11 = arith.constant 0 : index
      %c0_12 = arith.constant 0 : index
      %c0_13 = arith.constant 0 : index
      %13 = vector.load %arg2[%c1, %c0_10, %c0_11, %c0_12, %c0_13] : memref<3x1x4x17x17xbf16, #tpu.memory_space<vmem>>, vector<1x1x4x17x17xbf16>
      %14 = vector.shape_cast %13 : vector<1x1x4x17x17xbf16> to vector<4x17x17xbf16>
      %c0_14 = arith.constant 0 : index
      %c0_15 = arith.constant 0 : index
      %c0_16 = arith.constant 0 : index
      %15 = vector.load %arg4[%c0_14, %c0_15, %c0_16] : memref<4x1x17xf32, #tpu.memory_space<vmem>>, vector<4x1x17xf32>
      %16 = arith.truncf %15 : vector<4x1x17xf32> to vector<4x1x17xbf16>
      "tpu.trace_start"() <{level = 10 : i32, message = "hxn,hnm->hxm"}> : () -> ()
      %cst = arith.constant dense<0.000000e+00> : vector<4x1x17xf32>
      %17 = tpu.matmul %16, %14, %cst {dimension_numbers = #tpu.dot_dimension_numbers<[2], [1], [1], [2], [0, 0, 0, 1, 1, 2], [0], [0]>} : vector<4x1x17xbf16>, vector<4x17x17xbf16>, vector<4x1x17xf32> -> vector<4x1x17xf32>
      "tpu.trace_stop"() : () -> ()
      %c0_17 = arith.constant 0 : index
      %c0_18 = arith.constant 0 : index
      %c0_19 = arith.constant 0 : index
      %18 = vector.load %arg4[%c0_17, %c0_18, %c0_19] : memref<4x1x17xf32, #tpu.memory_space<vmem>>, vector<4x1x17xf32>
      tpu.vector_store %arg4[%c0_17, %c0_18, %c0_19], %17 {strides = array<i32>} : memref<4x1x17xf32, #tpu.memory_space<vmem>>, vector<4x1x17xf32>,
      %c0_20 = arith.constant 0 : index
      %c0_21 = arith.constant 0 : index
      %c0_22 = arith.constant 0 : index
      %c0_23 = arith.constant 0 : index
      %c0_24 = arith.constant 0 : index
      %19 = vector.load %arg2[%c0_20, %c0_21, %c0_22, %c0_23, %c0_24] : memref<3x1x4x17x17xbf16, #tpu.memory_space<vmem>>, vector<1x1x4x17x17xbf16>
      %20 = vector.shape_cast %19 : vector<1x1x4x17x17xbf16> to vector<4x17x17xbf16>
      %c0_25 = arith.constant 0 : index
      %c0_26 = arith.constant 0 : index
      %c0_27 = arith.constant 0 : index
      %21 = vector.load %arg4[%c0_25, %c0_26, %c0_27] : memref<4x1x17xf32, #tpu.memory_space<vmem>>, vector<4x1x17xf32>
      %22 = arith.truncf %21 : vector<4x1x17xf32> to vector<4x1x17xbf16>
      "tpu.trace_start"() <{level = 10 : i32, message = "hxn,hnm->hxm"}> : () -> ()
      %cst_28 = arith.constant dense<0.000000e+00> : vector<4x1x17xf32>
      %23 = tpu.matmul %22, %20, %cst_28 {dimension_numbers = #tpu.dot_dimension_numbers<[2], [1], [1], [2], [0, 0, 0, 1, 1, 2], [0], [0]>} : vector<4x1x17xbf16>, vector<4x17x17xbf16>, vector<4x1x17xf32> -> vector<4x1x17xf32>
      "tpu.trace_stop"() : () -> ()
      %c0_29 = arith.constant 0 : index
      %c0_30 = arith.constant 0 : index
      %c0_31 = arith.constant 0 : index
      %24 = vector.load %arg4[%c0_29, %c0_30, %c0_31] : memref<4x1x17xf32, #tpu.memory_space<vmem>>, vector<4x1x17xf32>
      tpu.vector_store %arg4[%c0_29, %c0_30, %c0_31], %23 {strides = array<i32>} : memref<4x1x17xf32, #tpu.memory_space<vmem>>, vector<4x1x17xf32>,
    } else {
    }
    %c0_i32_1 = arith.constant 0 : i32
    %3 = arith.cmpi sgt, %arg1, %c0_i32_1 : i32
    %4 = arith.extui %3 : i1 to i32
    %c0_i32_2 = arith.constant 0 : i32
    %5 = arith.cmpi ne, %4, %c0_i32_2 : i32
    scf.if %5 {
      %c2 = arith.constant 2 : index
      %c0 = arith.constant 0 : index
      %c0_4 = arith.constant 0 : index
      %c0_5 = arith.constant 0 : index
      %c0_6 = arith.constant 0 : index
      %9 = vector.load %arg2[%c2, %c0, %c0_4, %c0_5, %c0_6] : memref<3x1x4x17x17xbf16, #tpu.memory_space<vmem>>, vector<1x1x4x17x17xbf16>
      %10 = vector.shape_cast %9 : vector<1x1x4x17x17xbf16> to vector<4x17x17xbf16>
      %c0_7 = arith.constant 0 : index
      %c0_8 = arith.constant 0 : index
      %c0_9 = arith.constant 0 : index
      %11 = vector.load %arg4[%c0_7, %c0_8, %c0_9] : memref<4x1x17xf32, #tpu.memory_space<vmem>>, vector<4x1x17xf32>
      %12 = arith.truncf %11 : vector<4x1x17xf32> to vector<4x1x17xbf16>
      "tpu.trace_start"() <{level = 10 : i32, message = "hxn,hnm->hxm"}> : () -> ()
      %cst = arith.constant dense<0.000000e+00> : vector<4x1x17xf32>
      %13 = tpu.matmul %12, %10, %cst {dimension_numbers = #tpu.dot_dimension_numbers<[2], [1], [1], [2], [0, 0, 0, 1, 1, 2], [0], [0]>} : vector<4x1x17xbf16>, vector<4x17x17xbf16>, vector<4x1x17xf32> -> vector<4x1x17xf32>
      "tpu.trace_stop"() : () -> ()
      %c0_10 = arith.constant 0 : index
      %c0_11 = arith.constant 0 : index
      %c0_12 = arith.constant 0 : index
      %14 = vector.load %arg4[%c0_10, %c0_11, %c0_12] : memref<4x1x17xf32, #tpu.memory_space<vmem>>, vector<4x1x17xf32>
      tpu.vector_store %arg4[%c0_10, %c0_11, %c0_12], %13 {strides = array<i32>} : memref<4x1x17xf32, #tpu.memory_space<vmem>>, vector<4x1x17xf32>,
      %c1 = arith.constant 1 : index
      %c0_13 = arith.constant 0 : index
      %c0_14 = arith.constant 0 : index
      %c0_15 = arith.constant 0 : index
      %c0_16 = arith.constant 0 : index
      %15 = vector.load %arg2[%c1, %c0_13, %c0_14, %c0_15, %c0_16] : memref<3x1x4x17x17xbf16, #tpu.memory_space<vmem>>, vector<1x1x4x17x17xbf16>
      %16 = vector.shape_cast %15 : vector<1x1x4x17x17xbf16> to vector<4x17x17xbf16>
      %c0_17 = arith.constant 0 : index
      %c0_18 = arith.constant 0 : index
      %c0_19 = arith.constant 0 : index
      %17 = vector.load %arg4[%c0_17, %c0_18, %c0_19] : memref<4x1x17xf32, #tpu.memory_space<vmem>>, vector<4x1x17xf32>
      %18 = arith.truncf %17 : vector<4x1x17xf32> to vector<4x1x17xbf16>
      "tpu.trace_start"() <{level = 10 : i32, message = "hxn,hnm->hxm"}> : () -> ()
      %cst_20 = arith.constant dense<0.000000e+00> : vector<4x1x17xf32>
      %19 = tpu.matmul %18, %16, %cst_20 {dimension_numbers = #tpu.dot_dimension_numbers<[2], [1], [1], [2], [0, 0, 0, 1, 1, 2], [0], [0]>} : vector<4x1x17xbf16>, vector<4x17x17xbf16>, vector<4x1x17xf32> -> vector<4x1x17xf32>
      "tpu.trace_stop"() : () -> ()
      %c0_21 = arith.constant 0 : index
      %c0_22 = arith.constant 0 : index
      %c0_23 = arith.constant 0 : index
      %20 = vector.load %arg4[%c0_21, %c0_22, %c0_23] : memref<4x1x17xf32, #tpu.memory_space<vmem>>, vector<4x1x17xf32>
      tpu.vector_store %arg4[%c0_21, %c0_22, %c0_23], %19 {strides = array<i32>} : memref<4x1x17xf32, #tpu.memory_space<vmem>>, vector<4x1x17xf32>,
      %c0_24 = arith.constant 0 : index
      %c0_25 = arith.constant 0 : index
      %c0_26 = arith.constant 0 : index
      %c0_27 = arith.constant 0 : index
      %c0_28 = arith.constant 0 : index
      %21 = vector.load %arg2[%c0_24, %c0_25, %c0_26, %c0_27, %c0_28] : memref<3x1x4x17x17xbf16, #tpu.memory_space<vmem>>, vector<1x1x4x17x17xbf16>
      %22 = vector.shape_cast %21 : vector<1x1x4x17x17xbf16> to vector<4x17x17xbf16>
      %c0_29 = arith.constant 0 : index
      %c0_30 = arith.constant 0 : index
      %c0_31 = arith.constant 0 : index
      %23 = vector.load %arg4[%c0_29, %c0_30, %c0_31] : memref<4x1x17xf32, #tpu.memory_space<vmem>>, vector<4x1x17xf32>
      %24 = arith.truncf %23 : vector<4x1x17xf32> to vector<4x1x17xbf16>
      "tpu.trace_start"() <{level = 10 : i32, message = "hxn,hnm->hxm"}> : () -> ()
      %cst_32 = arith.constant dense<0.000000e+00> : vector<4x1x17xf32>
      %25 = tpu.matmul %24, %22, %cst_32 {dimension_numbers = #tpu.dot_dimension_numbers<[2], [1], [1], [2], [0, 0, 0, 1, 1, 2], [0], [0]>} : vector<4x1x17xbf16>, vector<4x17x17xbf16>, vector<4x1x17xf32> -> vector<4x1x17xf32>
      "tpu.trace_stop"() : () -> ()
      %c0_33 = arith.constant 0 : index
      %c0_34 = arith.constant 0 : index
      %c0_35 = arith.constant 0 : index
      %26 = vector.load %arg4[%c0_33, %c0_34, %c0_35] : memref<4x1x17xf32, #tpu.memory_space<vmem>>, vector<4x1x17xf32>
      tpu.vector_store %arg4[%c0_33, %c0_34, %c0_35], %25 {strides = array<i32>} : memref<4x1x17xf32, #tpu.memory_space<vmem>>, vector<4x1x17xf32>,
    } else {
    }
    %c1_i32 = arith.constant 1 : i32
    %6 = arith.cmpi eq, %arg1, %c1_i32 : i32
    %7 = arith.extui %6 : i1 to i32
    %c0_i32_3 = arith.constant 0 : i32
    %8 = arith.cmpi ne, %7, %c0_i32_3 : i32
    scf.if %8 {
      %c0 = arith.constant 0 : index
      %c0_4 = arith.constant 0 : index
      %c0_5 = arith.constant 0 : index
      %9 = vector.load %arg4[%c0, %c0_4, %c0_5] : memref<4x1x17xf32, #tpu.memory_space<vmem>>, vector<4x1x17xf32>
      %10 = vector.extract_strided_slice %9 {offsets = [0, 0, 1], sizes = [4, 1, 16], strides = [1, 1, 1]} : vector<4x1x17xf32> to vector<4x1x16xf32>
      %cst = arith.constant dense<0xFF800000> : vector<1x16xf32>
      %11 = vector.multi_reduction <maximumf>, %10, %cst [0] : vector<4x1x16xf32> to vector<1x16xf32>
      %12 = vector.shape_cast %11 : vector<1x16xf32> to vector<1x1x16xf32>
      %c0_6 = arith.constant 0 : index
      %c0_7 = arith.constant 0 : index
      %c0_8 = arith.constant 0 : index
      %13 = vector.load %arg3[%c0_6, %c0_7, %c0_8] : memref<1x1x16xf32, #tpu.memory_space<vmem>>, vector<1x1x16xf32>
      tpu.vector_store %arg3[%c0_6, %c0_7, %c0_8], %12 {strides = array<i32>} : memref<1x1x16xf32, #tpu.memory_space<vmem>>, vector<1x1x16xf32>,
    } else {
    }
    return
  }
  func.func @transform_0(%arg0: i32, %arg1: i32) -> (i32, i32, i32, i32, i32) {
    %c1_i32 = arith.constant 1 : i32
    %0 = arith.subi %c1_i32, %arg1 : i32
    %c0_i32 = arith.constant 0 : i32
    %c0_i32_0 = arith.constant 0 : i32
    %c0_i32_1 = arith.constant 0 : i32
    %c0_i32_2 = arith.constant 0 : i32
    return %0, %arg0, %c0_i32, %c0_i32_0, %c0_i32_1 : i32, i32, i32, i32, i32
  }
  func.func @transform_1(%arg0: i32, %arg1: i32) -> (i32, i32, i32) {
    %c0_i32 = arith.constant 0 : i32
    %c0_i32_0 = arith.constant 0 : i32
    %c0_i32_1 = arith.constant 0 : i32
    return %arg0, %c0_i32, %c0_i32_0 : i32, i32, i32
  }
}

</mosaic_0001>

<bundles_post_ra>
// kernel: tpu_custom_call.1
= control target key start
LH: loop header
LB: loop body
LE: loop exit
PB: predicated region body
PF: predicated region fallthrough
CT: control target
= control target key end

     0   :  { %6 = vsyncpa [#allocation5], 0  ;;  %s2699_s0 = inlined_call_operand.vmem [shape: bf16[6,8,4,17,17], index: 0, kind: input, shape index: {}]   ;;  %s2700_s1 = inlined_call_operand.hbm [shape: f32[8,1,16], index: 1, kind: output, shape index: {}]  }
   0x1   :  { %8 = vsyncpa [#allocation5 + $0x1], 0  ;;  %s2291_s6 = smov 0   ;;  %s2293_s7 = smov 0  }
   0x2   :  { %s2295_s8 = smov 0   ;;  %s2297_s9 = smov 0  }
   0x3   :  { %s2299_s10 = smov 0   ;;  %s2301_s11 = smov 0  }
   0x4   :  { %s2303_s12 = smov 0   ;;  %s2305_s13 = smov 0  }
   0x5   :  { %s2307_s14 = smov 0   ;;  %s2309_s15 = smov 0  }
   0x6 LB: > { %s1690_s16 = sadd.s32 4294967295, %s2271_s15   ;;  %s1691_s17 = sadd.s32 4294967294, %s2271_s15   ;;  %s2271_s15 = sphi %s2309_s15, %s14_s15   ;;  %s2267_s14 = sphi %s2307_s14, %s2712_s14   ;;  %s2263_s13 = sphi %s2305_s13, %s2711_s13   ;;  %s2259_s12 = sphi %s2303_s12, %s2710_s12   ;;  %s2255_s11 = sphi %s2301_s11, %s2709_s11   ;;  %s2251_s10 = sphi %s2299_s10, %s2708_s10   ;;  %s2247_s9 = sphi %s2297_s9, %s2707_s9   ;;  %s2243_s8 = sphi %s2295_s8, %s2706_s8   ;;  %s2239_s7 = sphi %s2293_s7, %s2705_s7   ;;  %s2235_s6 = sphi %s2291_s6, %s2704_s6  }
   0x7   : > { %s23_s18 = sadd.s32 1, %s2263_s13  ;;  %s26_s19 = sadd.s32 1, %s2267_s14 }
   0x8   : > { %p24_p0 = scmp.ge.s32.totalorder %s23_s18, 2  ;;  %s30_s20 = ssub.s32 1, %s2263_s13 }
   0x9   : > { %s37_s21 = sadd.s32 1, %s2251_s10  ;;  %p44_p1 = scmp.ne.s32.totalorder %s2251_s10, %s2247_s9 }
   0xa   : > { %s2714_s18 = smov (%p24_p0, %s23_s18), 0  ;;  %s2716_s19 = smov (!%p24_p0, %s26_s19), %s2267_s14 }
   0xb   : > { %s31_s22 = ssub.s32 1, %s2714_s18  ;;  %p45_p2 = scmp.eq.s32.totalorder %s2271_s15, 0 }
   0xc   : > { %p28_p3 = scmp.ge.s32.totalorder %s2716_s19, 8  ;;  %s32_s23 = ssub.s32 %s30_s20, %s31_s22 }
   0xd   : > { %p2356_p4 = por %p45_p2, %p44_p1  ;;  %s63_s25 = sadd.s32 1, %s2243_s8 }
   0xe   : > { %s2718_s19 = smov (%p28_p3, %s2716_s19), 0  ;;  %p73_p5 = scmp.ne.s32.totalorder %s2243_s8, %s2239_s7 }
   0xf   : > { %p74_p6 = scmp.eq.s32.totalorder %s1690_s16, 15  ;;  %s33_s26 = ssub.s32 %s2267_s14, %s2718_s19 }
  0x10   : > { %p79_p7 = scmp.ne.s32.totalorder %s2239_s7, %s2235_s6  ;;  %s34_s27 = sor.u32 %s33_s26, %s32_s23 }
  0x11   : > { %p61_p8 = scmp.eq.s32.totalorder %s33_s26, 0  ;;  %p35_p9 = scmp.eq.s32.totalorder %s34_s27, 0 }
  0x12   : > { %p2369_p10 = por %p74_p6, %p73_p5  ;;  %p80_p11 = scmp.eq.s32.totalorder %s1691_s17, 15 }
  0x13   : > { %s2374_s29 = scalar_select %p61_p8, %s2243_s8, %s63_s25  }
  0x14   : > { %s2377_s30 = scalar_select %p35_p9, %s2251_s10, %s37_s21  }
  0x15   : > { %p2379_p12 = por %p80_p11, %p79_p7  ;;  %p1693_p13 = scmp.ge.s32.totalorder %s2271_s15, 16 }
  0x17   : > { %96 = sbr.rel (%p1693_p13) target bundleno = 48 (0x30), region = 16 }
  0x1e   : > { %99 = sbr.rel (!%p2356_p4) target bundleno = 48 (0x30), region = 20  ;;  %s101_s3 = sand.u32 (%p2356_p4), 1, %s2251_s10  }
  0x1f   : > { %s2022_s4 = smul.u32 (%p2356_p4), 144, %s101_s3 }
  0x20   : > { %s2023_s5 = smul.u32 (%p2356_p4), 12, %s2267_s14 }
  0x21   : > { %s2032_s16 = smul.u32 (%p2356_p4), 288, %s30_s20  ;;  %s2398_s20 = scalar_lea.vmem (%p2356_p4), [#allocation3], %s2022_s4 }
  0x23   : > { %s108_s21 = sadd.s32 (%p2356_p4), %s2032_s16, %s2023_s5 }
  0x24   : > { %s1694_s17 = sshll.u32 (%p2356_p4), %s108_s21, 2 }
  0x25   : > { %s2393_s25 = scalar_lea.vmem %s2699_s0, %s1694_s17 }
  0x26   : > { %v126_v0 = vld [vmem:[%s2393_s25] sm:$0xff]   ;;  %v130_v1 = vld [vmem:[%s2393_s25 + $0x8] sm:$0xff]   ;;  %v134_v2 = vld [vmem:[%s2393_s25 + $0x10] sm:$0xff]  }
  0x27   : > { %127 = vst [vmem:[%s2398_s20] sm:$0xff] %v126_v0   ;;  %131 = vst [vmem:[%s2398_s20 + $0x8] sm:$0xff] %v130_v1   ;;  %v138_v3 = vld [vmem:[%s2393_s25 + $0x18] sm:$0xff]   ;;  %v142_v4 = vld [vmem:[%s2393_s25 + $0x20] sm:$0xff]  }
  0x28   : > { %135 = vst [vmem:[%s2398_s20 + $0x10] sm:$0xff] %v134_v2   ;;  %v146_v5 = vld [vmem:[%s2393_s25 + $0x28] sm:$0xff]   ;;  %139 = vst [vmem:[%s2398_s20 + $0x18] sm:$0xff] %v138_v3   ;;  %v150_v6 = vld [vmem:[%s2393_s25 + $0x180] sm:$0xff]  }
  0x29   : > { %143 = vst [vmem:[%s2398_s20 + $0x20] sm:$0xff] %v142_v4   ;;  %147 = vst [vmem:[%s2398_s20 + $0x28] sm:$0xff] %v146_v5   ;;  %v154_v7 = vld [vmem:[%s2393_s25 + $0x188] sm:$0xff]   ;;  %v158_v8 = vld [vmem:[%s2393_s25 + $0x190] sm:$0xff]  }
  0x2a   : > { %151 = vst [vmem:[%s2398_s20 + $0x30] sm:$0xff] %v150_v6   ;;  %155 = vst [vmem:[%s2398_s20 + $0x38] sm:$0xff] %v154_v7   ;;  %v162_v9 = vld [vmem:[%s2393_s25 + $0x198] sm:$0xff]   ;;  %v166_v10 = vld [vmem:[%s2393_s25 + $0x1a0] sm:$0xff]  }
  0x2b   : > { %159 = vst [vmem:[%s2398_s20 + $0x40] sm:$0xff] %v158_v8   ;;  %v170_v11 = vld [vmem:[%s2393_s25 + $0x1a8] sm:$0xff]   ;;  %163 = vst [vmem:[%s2398_s20 + $0x48] sm:$0xff] %v162_v9   ;;  %v174_v12 = vld [vmem:[%s2393_s25 + $0x300] sm:$0xff]  }
  0x2c   : > { %167 = vst [vmem:[%s2398_s20 + $0x50] sm:$0xff] %v166_v10   ;;  %171 = vst [vmem:[%s2398_s20 + $0x58] sm:$0xff] %v170_v11   ;;  %v178_v13 = vld [vmem:[%s2393_s25 + $0x308] sm:$0xff]   ;;  %v182_v14 = vld [vmem:[%s2393_s25 + $0x310] sm:$0xff]  }
  0x2d   : > { %175 = vst [vmem:[%s2398_s20 + $0x60] sm:$0xff] %v174_v12   ;;  %179 = vst [vmem:[%s2398_s20 + $0x68] sm:$0xff] %v178_v13   ;;  %v186_v15 = vld [vmem:[%s2393_s25 + $0x318] sm:$0xff]   ;;  %v190_v16 = vld [vmem:[%s2393_s25 + $0x320] sm:$0xff]  }
  0x2e   : > { %183 = vst [vmem:[%s2398_s20 + $0x70] sm:$0xff] %v182_v14   ;;  %v194_v17 = vld [vmem:[%s2393_s25 + $0x328] sm:$0xff]   ;;  %187 = vst [vmem:[%s2398_s20 + $0x78] sm:$0xff] %v186_v15  }
  0x2f   : > { %191 = vst [vmem:[%s2398_s20 + $0x80] sm:$0xff] %v190_v16   ;;  %195 = vst [vmem:[%s2398_s20 + $0x88] sm:$0xff] %v194_v17  }
  0x30 PF: > { %p1695_p0 = scmp.ge.s32.totalorder %s2271_s15, 1  ;;  %p291_p1 = scmp.lt.s32.totalorder %s2271_s15, 17 }
  0x32   : > { %p292_p2 = pnand %p1695_p0, %p291_p1 }
  0x33   : > { %s298_s24 = sand.u32 (!%p292_p2), 1, %s2247_s9   ;;  %s314_s26 = sand.u32 (!%p292_p2), 1, %s2239_s7  }
  0x34   : > { %295 = sbr.rel (%p292_p2) target bundleno = 1349 (0x545), region = 61  ;;  %s2441_s4 = scalar_lea.vmem (!%p292_p2), [#allocation4], %s314_s26 }
  0x35   : > { %s2025_s27 = smul.u32 (!%p292_p2), 144, %s298_s24  ;;  %p1696_p3 = scmp.ne.s32.totalorder (!%p292_p2), %s2255_s11, 0 }
  0x37   : > { %s2437_s3 = scalar_lea.vmem (!%p292_p2), [#allocation3], %s2025_s27 }
  0x3b   : > { %322 = sbr.rel (%p1696_p3) target bundleno = 520 (0x208), region = 69  ;;  %v2121_v18 = vld [vmem:[%s2437_s3 + $0x30] sm:$0xff] (!%p1696_p3)   ;;  %v2273_v19 = vmov (!%p1696_p3), 0.0   ;;  %v2122_v20 = vld [vmem:[%s2437_s3 + $0x3c] sm:$0xff] (!%p1696_p3)   ;;  %vm371_vm0 = vcmask (!%p1696_p3), 1040384   ;;  %v2274_v22 = vmov (!%p1696_p3), 0  }
  0x3c   : > { %1862 = vmatprep.subr.bf16.mxu0 (!%p1696_p3), %v2273_v19  ;;  %1870 = vmatprep.subr.bf16.mxu1 (!%p1696_p3), %v2273_v19  ;;  %v2123_v21 = vld [vmem:[%s2437_s3 + $0x38] ss:$0 sps:$4 sm:$0x11] (!%p1696_p3)   ;;  %v2450_v23 = vsel (!%p1696_p3), %vm371_vm0, 65535, %v2274_v22  ;;  %v1697_v26 = vld [vmem:[%s2437_s3 + $0x60] sm:$0x1] (!%p1696_p3) }
  0x3d   : > { %1863 = vmatpush3.bf16.msra.mxu0 (!%p1696_p3), %v2121_v18  ;;  %1871 = vmatpush3.bf16.msra.mxu1 (!%p1696_p3), %v2122_v20  ;;  %v2124_v24 = vld [vmem:[%s2437_s3 + $0x44] ss:$0 sps:$4 sm:$0x11] (!%p1696_p3)   ;;  %v375_v25 = vand.u32 (!%p1696_p3), %v2123_v21, %v2450_v23  ;;  %vm332_vm1 = vcmask (!%p1696_p3), 131072   ;;  %vm2275_vm2 = vmmov (!%p1696_p3), 0   ;;  %v328_v28 = vunpack.c.l.bf16 (!%p1696_p3), %v1697_v26  ;;  %v2125_v36 = vld [vmem:[%s2437_s3 + $0x48] sm:$0xff] (!%p1696_p3)  }
  0x3e   : > { %1864 = vmatprep.subr.bf16.mxu0 (!%p1696_p3), %v2273_v19  ;;  %1872 = vmatprep.subr.bf16.mxu1 (!%p1696_p3), %v2273_v19  ;;  %v430_v27 = vand.u32 (!%p1696_p3), %v2124_v24, %v2450_v23  ;;  %v1698_v29 = vld [vmem:[%s2437_s3 + $0x6c] sm:$0x1] (!%p1696_p3)  ;;  %v1699_v31 = vld [vmem:[%s2437_s3 + $0x78] sm:$0x1] (!%p1696_p3)  ;;  %v1700_v32 = vld [vmem:[%s2437_s3 + $0x84] sm:$0x1] (!%p1696_p3) }
  0x3f   : > { %1866 = vmatprep.mubr.msk.bf16.mxu0 (!%p1696_p3), %vm2275_vm2, %v2273_v19  ;;  %1874 = vmatprep.mubr.msk.bf16.mxu1 (!%p1696_p3), %vm2275_vm2, %v2273_v19  ;;  %v329_v30 = vunpack.c.l.bf16 (!%p1696_p3), %v1698_v29  ;;  %333 = vst.msk [vmem:[#allocation2] sm:$0x1] (!%p1696_p3), %vm332_vm1, %v328_v28  ;;  %v330_v33 = vunpack.c.l.bf16 (!%p1696_p3), %v1699_v31  ;;  %v331_v34 = vunpack.c.l.bf16 (!%p1696_p3), %v1700_v32  ;;  %vm367_vm3 = vcmask (!%p1696_p3), 138240   ;;  %v2127_v37 = vld [vmem:[%s2437_s3 + $0x50] ss:$0 sps:$4 sm:$0x11] (!%p1696_p3)  }
  0x40   : > { %v2126_v40 = vld [vmem:[%s2437_s3 + $0x54] sm:$0xff] (!%p1696_p3)   ;;  %v2128_v41 = vld [vmem:[%s2437_s3 + $0x5c] ss:$0 sps:$4 sm:$0x11] (!%p1696_p3)   ;;  %v485_v43 = vand.u32 (!%p1696_p3), %v2127_v37, %v2450_v23  ;;  %v2129_v49 = vld [vmem:[%s2437_s3] sm:$0xff] (!%p1696_p3)  }
  0x41   : > { %1865 = vmatpush3.bf16.msra.mxu0 (!%p1696_p3), %v375_v25  ;;  %1873 = vmatpush3.bf16.msra.mxu1 (!%p1696_p3), %v430_v27  ;;  %334 = vst.msk [vmem:[#allocation2 + $0x1] sm:$0x1] (!%p1696_p3), %vm332_vm1, %v329_v30  ;;  %335 = vst.msk [vmem:[#allocation2 + $0x2] sm:$0x1] (!%p1696_p3), %vm332_vm1, %v330_v33  ;;  %v540_v44 = vand.u32 (!%p1696_p3), %v2128_v41, %v2450_v23  ;;  %v2130_v50 = vld [vmem:[%s2437_s3 + $0xc] sm:$0xff] (!%p1696_p3)   ;;  %v2133_v63 = vld [vmem:[%s2437_s3 + $0x18] sm:$0xff] (!%p1696_p3)  }
  0x42   : > { %1878 = vmatprep.subr.bf16.mxu0 %v2273_v19  ;;  %1886 = vmatprep.subr.bf16.mxu1 %v2273_v19  ;;  %336 = vst.msk [vmem:[#allocation2 + $0x3] sm:$0x1] %vm332_vm1, %v331_v34  ;;  %v2131_v51 = vld [vmem:[%s2437_s3 + $0x8] ss:$0 sps:$4 sm:$0x11]  }
  0x43   : > { %v2132_v52 = vld [vmem:[%s2437_s3 + $0x14] ss:$0 sps:$4 sm:$0x11]   ;;  %v619_v53 = vand.u32 %v2131_v51, %v2450_v23  ;;  %v2135_v0 = vld [vmem:[%s2437_s3 + $0x20] ss:$0 sps:$4 sm:$0x11]  }
  0x44   : > { %v674_v54 = vand.u32 %v2132_v52, %v2450_v23  ;;  %v2136_v3 = vld [vmem:[%s2437_s3 + $0x2c] ss:$0 sps:$4 sm:$0x11]   ;;  %v2134_v8 = vld [vmem:[%s2437_s3 + $0x24] sm:$0xff]   ;;  %v729_v15 = vand.u32 %v2135_v0, %v2450_v23 }
  0x45   : > { %v784_v16 = vand.u32 %v2136_v3, %v2450_v23 }
  0x46   : > { %v350_v35 = vld [vmem:[#allocation2] sm:$0x1] }
  0x47   : > { %v354_v38 = vpack.c.bf16 %v350_v35, %v350_v35 }
  0x48   : > { %v351_v39 = vld [vmem:[#allocation2 + $0x1] sm:$0x1]  ;;  %v352_v45 = vld [vmem:[#allocation2 + $0x2] sm:$0x1] }
  0x49   : > { %v355_v42 = vpack.c.bf16 %v351_v39, %v351_v39  ;;  %1867 = vmatmul.mubr.msk.bf16.vlgmr.msra.gmra.mrb[0].mxu0 %vm367_vm3, %v354_v38  ;;  %v353_v46 = vld [vmem:[#allocation2 + $0x3] sm:$0x1]  ;;  %v356_v47 = vpack.c.bf16 %v352_v45, %v352_v45 }
  0x4a   : > { %1879 = vmatpush3.bf16.msra.mxu0 %v2125_v36  ;;  %1882 = vmatprep.mubr.msk.bf16.mxu0 %vm2275_vm2, %v2273_v19  ;;  %v357_v48 = vpack.c.bf16 %v353_v46, %v353_v46 }
  0x4b   : > { %1875 = vmatmul.mubr.msk.bf16.vlgmr.msra.gmra.mrb[0].mxu1 %vm367_vm3, %v355_v42  ;;  %1880 = vmatprep.subr.bf16.mxu0 %v2273_v19 }
  0x4c   : > { %1887 = vmatpush3.bf16.msra.mxu1 %v2126_v40  ;;  %1890 = vmatprep.mubr.msk.bf16.mxu1 %vm2275_vm2, %v2273_v19 }
  0x4d   : > { %1888 = vmatprep.subr.bf16.mxu1 %v2273_v19 }
  0x4e   : > { %1881 = vmatpush3.bf16.msra.mxu0 %v485_v43 }
  0x4f   : > { %1894 = vmatprep.subr.bf16.mxu0 %v2273_v19 }
  0x50   : > { %1889 = vmatpush3.bf16.msra.mxu1 %v540_v44 }
  0x51   : > { %1902 = vmatprep.subr.bf16.mxu1 %v2273_v19  ;;  %1883 = vmatmul.mubr.msk.bf16.vlgmr.msra.gmra.mrb[4].mxu0 %vm367_vm3, %v356_v47 }
  0x52   : > { %1898 = vmatprep.mubr.msk.bf16.mxu0 %vm2275_vm2, %v2273_v19  ;;  %1895 = vmatpush3.bf16.msra.mxu0 %v2129_v49 }
  0x53   : > { %1891 = vmatmul.mubr.msk.bf16.vlgmr.msra.gmra.mrb[4].mxu1 %vm367_vm3, %v357_v48  ;;  %1896 = vmatprep.subr.bf16.mxu0 %v2273_v19 }
  0x54   : > { %1906 = vmatprep.mubr.msk.bf16.mxu1 %vm2275_vm2, %v2273_v19  ;;  %1903 = vmatpush3.bf16.msra.mxu1 %v2130_v50 }
  0x55   : > { %1904 = vmatprep.subr.bf16.mxu1 %v2273_v19 }
  0x56   : > { %1897 = vmatpush3.bf16.msra.mxu0 %v619_v53 }
  0x57   : > { %1910 = vmatprep.subr.bf16.mxu0 %v2273_v19 }
  0x58   : > { %1905 = vmatpush3.bf16.msra.mxu1 %v674_v54 }
  0x59   : > { %1918 = vmatprep.subr.bf16.mxu1 %v2273_v19 }
 0x11c   : > { %v411_v55 = vpop.f32.mrb[0].mxu0 }
 0x11d   : > { %582 = vst.msk [vmem:[#allocation2] sm:$0x1] %vm332_vm1, %v411_v55  ;;  %v1868_v57 = vpop.f32.mrb[1].mxu0 }
 0x11e   : > { %v466_v56 = vpop.f32.mrb[0].mxu1  ;;  %v414_v59 = vpop.f32.mrb[2].mxu0 }
 0x11f   : > { %583 = vst.msk [vmem:[#allocation2 + $0x1] sm:$0x1] %vm332_vm1, %v466_v56  ;;  %v1876_v58 = vpop.f32.mrb[1].mxu1  ;;  %v1869_v61 = vpop.f32.mrb[3].mxu0 }
 0x120   : > { %v469_v60 = vpop.f32.mrb[2].mxu1 }
 0x121   : > { %v1877_v62 = vpop.f32.mrb[3].mxu1 }
 0x124   : > { %v521_v1 = vpop.f32.mrb[4].mxu0  ;;  %v598_v2 = vld [vmem:[#allocation2] sm:$0x1] }
 0x125   : > { %584 = vst.msk [vmem:[#allocation2 + $0x2] sm:$0x1] %vm332_vm1, %v521_v1  ;;  %v1884_v5 = vpop.f32.mrb[5].mxu0  ;;  %v602_v6 = vpack.c.bf16 %v598_v2, %v598_v2 }
 0x126   : > { %v576_v4 = vpop.f32.mrb[4].mxu1  ;;  %v599_v7 = vld [vmem:[#allocation2 + $0x1] sm:$0x1]  ;;  %v524_v10 = vpop.f32.mrb[6].mxu0 }
 0x127   : > { %585 = vst.msk [vmem:[#allocation2 + $0x3] sm:$0x1] %vm332_vm1, %v576_v4  ;;  %v1892_v9 = vpop.f32.mrb[5].mxu1  ;;  %v603_v11 = vpack.c.bf16 %v599_v7, %v599_v7  ;;  %v1885_v13 = vpop.f32.mrb[7].mxu0  ;;  %1899 = vmatmul.mubr.msk.bf16.vlgmr.msra.gmra.mrb[8].mxu0 %vm367_vm3, %v602_v6 }
 0x128   : > { %v579_v12 = vpop.f32.mrb[6].mxu1  ;;  %1911 = vmatpush3.bf16.msra.mxu0 %v2133_v63  ;;  %1914 = vmatprep.mubr.msk.bf16.mxu0 %vm2275_vm2, %v2273_v19 }
 0x129   : > { %v1893_v14 = vpop.f32.mrb[7].mxu1  ;;  %1907 = vmatmul.mubr.msk.bf16.vlgmr.msra.gmra.mrb[8].mxu1 %vm367_vm3, %v603_v11  ;;  %1912 = vmatprep.subr.bf16.mxu0 %v2273_v19 }
 0x12a   : > { %1919 = vmatpush3.bf16.msra.mxu1 %v2134_v8  ;;  %1922 = vmatprep.mubr.msk.bf16.mxu1 %vm2275_vm2, %v2273_v19 }
 0x12b   : > { %1920 = vmatprep.subr.bf16.mxu1 %v2273_v19 }
 0x12c   : > { %1913 = vmatpush3.bf16.msra.mxu0 %v729_v15  ;;  %v600_v17 = vld [vmem:[#allocation2 + $0x2] sm:$0x1] }
 0x12d   : > { %v604_v18 = vpack.c.bf16 %v600_v17, %v600_v17 }
 0x12e   : > { %1921 = vmatpush3.bf16.msra.mxu1 %v784_v16  ;;  %v601_v20 = vld [vmem:[#allocation2 + $0x3] sm:$0x1] }
 0x12f   : > { %v605_v21 = vpack.c.bf16 %v601_v20, %v601_v20  ;;  %1915 = vmatmul.mubr.msk.bf16.vlgmr.msra.gmra.mrb[12].mxu0 %vm367_vm3, %v604_v18 }
 0x131   : > { %1923 = vmatmul.mubr.msk.bf16.vlgmr.msra.gmra.mrb[12].mxu1 %vm367_vm3, %v605_v21 }
 0x1fa   : > { %v655_v22 = vpop.f32.mrb[8].mxu0 }
 0x1fb   : > { %826 = vst.msk [vmem:[#allocation2] sm:$0x1] %vm332_vm1, %v655_v22  ;;  %v1900_v24 = vpop.f32.mrb[9].mxu0 }
 0x1fc   : > { %v710_v23 = vpop.f32.mrb[8].mxu1  ;;  %v658_v26 = vpop.f32.mrb[10].mxu0 }
 0x1fd   : > { %827 = vst.msk [vmem:[#allocation2 + $0x1] sm:$0x1] %vm332_vm1, %v710_v23  ;;  %v1908_v25 = vpop.f32.mrb[9].mxu1  ;;  %v1901_v27 = vpop.f32.mrb[11].mxu0 }
 0x1fe   : > { %v713_v19 = vpop.f32.mrb[10].mxu1 }
 0x1ff   : > { %v1909_v28 = vpop.f32.mrb[11].mxu1 }
 0x202   : > { %v765_v29 = vpop.f32.mrb[12].mxu0 }
 0x203   : > { %828 = vst.msk [vmem:[#allocation2 + $0x2] sm:$0x1] %vm332_vm1, %v765_v29  ;;  %v1916_v31 = vpop.f32.mrb[13].mxu0 }
 0x204   : > { %v820_v30 = vpop.f32.mrb[12].mxu1  ;;  %v768_v33 = vpop.f32.mrb[14].mxu0 }
 0x205   : > { %829 = vst.msk [vmem:[#allocation2 + $0x3] sm:$0x1] %vm332_vm1, %v820_v30  ;;  %v1924_v32 = vpop.f32.mrb[13].mxu1  ;;  %v1917_v35 = vpop.f32.mrb[15].mxu0 }
 0x206   : > { %v823_v34 = vpop.f32.mrb[14].mxu1 }
 0x207   : > { %v1925_v36 = vpop.f32.mrb[15].mxu1 }
 0x208 PF: > { %p1737_p4 = scmp.le.s32.totalorder %s2255_s11, 0 }
 0x209   : > { %v2137_v37 = vld [vmem:[%s2437_s3 + $0x60] sm:$0xff] (!%p1737_p4)   ;;  %v2276_v38 = vmov (!%p1737_p4), 0.0   ;;  %v2138_v39 = vld [vmem:[%s2437_s3 + $0x6c] sm:$0xff] (!%p1737_p4)   ;;  %vm868_vm4 = vcmask (!%p1737_p4), 1040384   ;;  %v2277_v41 = vmov (!%p1737_p4), 0   ;;  %vm2278_vm5 = vmmov (!%p1737_p4), 0  }
 0x20a   : > { %833 = sbr.rel (%p1737_p4) target bundleno = 1197 (0x4ad), region = 73  ;;  %1926 = vmatprep.subr.bf16.mxu0 (!%p1737_p4), %v2276_v38  ;;  %1934 = vmatprep.subr.bf16.mxu1 (!%p1737_p4), %v2276_v38  ;;  %v2139_v40 = vld [vmem:[%s2437_s3 + $0x68] ss:$0 sps:$4 sm:$0x11] (!%p1737_p4)   ;;  %v2533_v42 = vsel (!%p1737_p4), %vm868_vm4, 65535, %v2277_v41  ;;  %vm864_vm6 = vcmask (!%p1737_p4), 138240  }
 0x20b   : > { %1927 = vmatpush3.bf16.msra.mxu0 (!%p1737_p4), %v2137_v37  ;;  %1935 = vmatpush3.bf16.msra.mxu1 (!%p1737_p4), %v2138_v39  ;;  %v2140_v43 = vld [vmem:[%s2437_s3 + $0x74] ss:$0 sps:$4 sm:$0x11] (!%p1737_p4)   ;;  %v872_v44 = vand.u32 (!%p1737_p4), %v2139_v40, %v2533_v42  ;;  %v2141_v50 = vld [vmem:[%s2437_s3 + $0x78] sm:$0xff] (!%p1737_p4)   ;;  %v2142_v51 = vld [vmem:[%s2437_s3 + $0x84] sm:$0xff] (!%p1737_p4)   ;;  %vm1079_vm7 = vcmask (!%p1737_p4), 131072  }
 0x20c   : > { %1928 = vmatprep.subr.bf16.mxu0 (!%p1737_p4), %v2276_v38  ;;  %1936 = vmatprep.subr.bf16.mxu1 (!%p1737_p4), %v2276_v38  ;;  %v847_v45 = vld [vmem:[#allocation2] sm:$0x1] (!%p1737_p4)  ;;  %v927_v47 = vand.u32 (!%p1737_p4), %v2140_v43, %v2533_v42  ;;  %v2143_v52 = vld [vmem:[%s2437_s3 + $0x80] ss:$0 sps:$4 sm:$0x11] (!%p1737_p4)   ;;  %v2145_v60 = vld [vmem:[%s2437_s3 + $0x30] sm:$0xff] (!%p1737_p4)  }
 0x20d   : > { %1930 = vmatprep.mubr.msk.bf16.mxu0 (!%p1737_p4), %vm2278_vm5, %v2276_v38  ;;  %1938 = vmatprep.mubr.msk.bf16.mxu1 (!%p1737_p4), %vm2278_vm5, %v2276_v38  ;;  %v851_v48 = vpack.c.bf16 (!%p1737_p4), %v847_v45, %v847_v45  ;;  %v2144_v53 = vld [vmem:[%s2437_s3 + $0x8c] ss:$0 sps:$4 sm:$0x11] (!%p1737_p4)   ;;  %v982_v56 = vand.u32 (!%p1737_p4), %v2143_v52, %v2533_v42  ;;  %v2146_v61 = vld [vmem:[%s2437_s3 + $0x3c] sm:$0xff] (!%p1737_p4)   ;;  %v2150_v20 = vld [vmem:[%s2437_s3 + $0x54] sm:$0xff] (!%p1737_p4)  }
 0x20e   : > { %v848_v46 = vld [vmem:[#allocation2 + $0x1] sm:$0x1] (!%p1737_p4)  ;;  %v849_v54 = vld [vmem:[#allocation2 + $0x2] sm:$0x1] (!%p1737_p4)  ;;  %v1037_v57 = vand.u32 (!%p1737_p4), %v2144_v53, %v2533_v42  ;;  %v2153_v32 = vld [vmem:[%s2437_s3] sm:$0xff] (!%p1737_p4)  }
 0x20f   : > { %1929 = vmatpush3.bf16.msra.mxu0 (!%p1737_p4), %v872_v44  ;;  %v852_v49 = vpack.c.bf16 (!%p1737_p4), %v848_v46, %v848_v46  ;;  %1937 = vmatpush3.bf16.msra.mxu1 (!%p1737_p4), %v927_v47  ;;  %v850_v55 = vld [vmem:[#allocation2 + $0x3] sm:$0x1] (!%p1737_p4)  ;;  %v853_v58 = vpack.c.bf16 (!%p1737_p4), %v849_v54, %v849_v54  ;;  %v2147_v62 = vld [vmem:[%s2437_s3 + $0x38] ss:$0 sps:$4 sm:$0x11] (!%p1737_p4)  }
 0x210   : > { %1942 = vmatprep.subr.bf16.mxu0 (!%p1737_p4), %v2276_v38  ;;  %1950 = vmatprep.subr.bf16.mxu1 (!%p1737_p4), %v2276_v38  ;;  %v854_v59 = vpack.c.bf16 (!%p1737_p4), %v850_v55, %v850_v55  ;;  %v2148_v63 = vld [vmem:[%s2437_s3 + $0x44] ss:$0 sps:$4 sm:$0x11] (!%p1737_p4)   ;;  %v1118_v0 = vand.u32 (!%p1737_p4), %v2147_v62, %v2533_v42  ;;  %v2149_v10 = vld [vmem:[%s2437_s3 + $0x48] sm:$0xff] (!%p1737_p4)  }
 0x211   : > { %v1173_v1 = vand.u32 %v2148_v63, %v2533_v42  ;;  %v2151_v11 = vld [vmem:[%s2437_s3 + $0x50] ss:$0 sps:$4 sm:$0x11]   ;;  %v2152_v14 = vld [vmem:[%s2437_s3 + $0x5c] ss:$0 sps:$4 sm:$0x11]  }
 0x212   : > { %1931 = vmatmul.mubr.msk.bf16.vlgmr.msra.gmra.mrb[0].mxu0 %vm864_vm6, %v851_v48  ;;  %1939 = vmatmul.mubr.msk.bf16.vlgmr.msra.gmra.mrb[0].mxu1 %vm864_vm6, %v852_v49  ;;  %v1228_v19 = vand.u32 %v2151_v11, %v2533_v42  ;;  %v1283_v27 = vand.u32 %v2152_v14, %v2533_v42  ;;  %v2154_v33 = vld [vmem:[%s2437_s3 + $0xc] sm:$0xff]   ;;  %v2155_v34 = vld [vmem:[%s2437_s3 + $0x8] ss:$0 sps:$4 sm:$0x11]   ;;  %v2157_v48 = vld [vmem:[%s2437_s3 + $0x18] sm:$0xff]  }
 0x213   : > { %1943 = vmatpush3.bf16.msra.mxu0 %v2141_v50  ;;  %1951 = vmatpush3.bf16.msra.mxu1 %v2142_v51  ;;  %v2156_v35 = vld [vmem:[%s2437_s3 + $0x14] ss:$0 sps:$4 sm:$0x11]   ;;  %v1362_v36 = vand.u32 %v2155_v34, %v2533_v42  ;;  %v2159_v49 = vld [vmem:[%s2437_s3 + $0x20] ss:$0 sps:$4 sm:$0x11]  }
 0x214   : > { %1944 = vmatprep.subr.bf16.mxu0 %v2276_v38  ;;  %1952 = vmatprep.subr.bf16.mxu1 %v2276_v38  ;;  %v1417_v37 = vand.u32 %v2156_v35, %v2533_v42  ;;  %v2160_v52 = vld [vmem:[%s2437_s3 + $0x2c] ss:$0 sps:$4 sm:$0x11]  }
 0x215   : > { %1946 = vmatprep.mubr.msk.bf16.mxu0 %vm2278_vm5, %v2276_v38  ;;  %1954 = vmatprep.mubr.msk.bf16.mxu1 %vm2278_vm5, %v2276_v38 }
 0x217   : > { %1945 = vmatpush3.bf16.msra.mxu0 %v982_v56  ;;  %1953 = vmatpush3.bf16.msra.mxu1 %v1037_v57  ;;  %v2158_v57 = vld [vmem:[%s2437_s3 + $0x24] sm:$0xff]  }
 0x218   : > { %1958 = vmatprep.subr.bf16.mxu0 %v2276_v38  ;;  %1966 = vmatprep.subr.bf16.mxu1 %v2276_v38 }
 0x21a   : > { %1947 = vmatmul.mubr.msk.bf16.vlgmr.msra.gmra.mrb[4].mxu0 %vm864_vm6, %v853_v58  ;;  %1955 = vmatmul.mubr.msk.bf16.vlgmr.msra.gmra.mrb[4].mxu1 %vm864_vm6, %v854_v59 }
 0x21b   : > { %1962 = vmatprep.mubr.msk.bf16.mxu0 %vm2278_vm5, %v2276_v38  ;;  %1970 = vmatprep.mubr.msk.bf16.mxu1 %vm2278_vm5, %v2276_v38 }
 0x21c   : > { %1959 = vmatpush3.bf16.msra.mxu0 %v2145_v60  ;;  %1967 = vmatpush3.bf16.msra.mxu1 %v2146_v61 }
 0x21d   : > { %1960 = vmatprep.subr.bf16.mxu0 %v2276_v38  ;;  %1968 = vmatprep.subr.bf16.mxu1 %v2276_v38 }
 0x220   : > { %1961 = vmatpush3.bf16.msra.mxu0 %v1118_v0  ;;  %1969 = vmatpush3.bf16.msra.mxu1 %v1173_v1  ;;  %v1472_v0 = vand.u32 %v2159_v49, %v2533_v42  ;;  %v1527_v1 = vand.u32 %v2160_v52, %v2533_v42 }
 0x221   : > { %1974 = vmatprep.subr.bf16.mxu0 %v2276_v38  ;;  %1982 = vmatprep.subr.bf16.mxu1 %v2276_v38 }
 0x2e5   : > { %v908_v2 = vpop.f32.mrb[0].mxu0  ;;  %v963_v3 = vpop.f32.mrb[0].mxu1 }
 0x2e6   : > { %1080 = vst.msk [vmem:[#allocation2] sm:$0x1] %vm1079_vm7, %v908_v2  ;;  %v1932_v4 = vpop.f32.mrb[1].mxu0  ;;  %1081 = vst.msk [vmem:[#allocation2 + $0x1] sm:$0x1] %vm1079_vm7, %v963_v3  ;;  %v1940_v5 = vpop.f32.mrb[1].mxu1 }
 0x2e7   : > { %v911_v6 = vpop.f32.mrb[2].mxu0  ;;  %v966_v7 = vpop.f32.mrb[2].mxu1 }
 0x2e8   : > { %v1933_v8 = vpop.f32.mrb[3].mxu0  ;;  %v1941_v9 = vpop.f32.mrb[3].mxu1 }
 0x2ed   : > { %v1018_v12 = vpop.f32.mrb[4].mxu0  ;;  %v1097_v13 = vld [vmem:[#allocation2] sm:$0x1]  ;;  %v1073_v15 = vpop.f32.mrb[4].mxu1  ;;  %v1098_v18 = vld [vmem:[#allocation2 + $0x1] sm:$0x1] }
 0x2ee   : > { %1082 = vst.msk [vmem:[#allocation2 + $0x2] sm:$0x1] %vm1079_vm7, %v1018_v12  ;;  %v1948_v16 = vpop.f32.mrb[5].mxu0  ;;  %v1101_v17 = vpack.c.bf16 %v1097_v13, %v1097_v13  ;;  %1083 = vst.msk [vmem:[#allocation2 + $0x3] sm:$0x1] %vm1079_vm7, %v1073_v15  ;;  %v1956_v21 = vpop.f32.mrb[5].mxu1  ;;  %v1102_v23 = vpack.c.bf16 %v1098_v18, %v1098_v18 }
 0x2ef   : > { %v1021_v22 = vpop.f32.mrb[6].mxu0  ;;  %v1076_v24 = vpop.f32.mrb[6].mxu1 }
 0x2f0   : > { %v1949_v25 = vpop.f32.mrb[7].mxu0  ;;  %1963 = vmatmul.mubr.msk.bf16.vlgmr.msra.gmra.mrb[8].mxu0 %vm864_vm6, %v1101_v17  ;;  %v1957_v26 = vpop.f32.mrb[7].mxu1  ;;  %1971 = vmatmul.mubr.msk.bf16.vlgmr.msra.gmra.mrb[8].mxu1 %vm864_vm6, %v1102_v23 }
 0x2f1   : > { %1975 = vmatpush3.bf16.msra.mxu0 %v2149_v10  ;;  %1983 = vmatpush3.bf16.msra.mxu1 %v2150_v20 }
 0x2f2   : > { %1976 = vmatprep.subr.bf16.mxu0 %v2276_v38  ;;  %1984 = vmatprep.subr.bf16.mxu1 %v2276_v38 }
 0x2f3   : > { %1978 = vmatprep.mubr.msk.bf16.mxu0 %vm2278_vm5, %v2276_v38  ;;  %1986 = vmatprep.mubr.msk.bf16.mxu1 %vm2278_vm5, %v2276_v38 }
 0x2f5   : > { %1977 = vmatpush3.bf16.msra.mxu0 %v1228_v19  ;;  %v1099_v28 = vld [vmem:[#allocation2 + $0x2] sm:$0x1]  ;;  %1985 = vmatpush3.bf16.msra.mxu1 %v1283_v27  ;;  %v1100_v30 = vld [vmem:[#allocation2 + $0x3] sm:$0x1] }
 0x2f6   : > { %v1103_v29 = vpack.c.bf16 %v1099_v28, %v1099_v28  ;;  %1990 = vmatprep.subr.bf16.mxu0 %v2276_v38  ;;  %v1104_v31 = vpack.c.bf16 %v1100_v30, %v1100_v30  ;;  %1998 = vmatprep.subr.bf16.mxu1 %v2276_v38 }
 0x2f8   : > { %1979 = vmatmul.mubr.msk.bf16.vlgmr.msra.gmra.mrb[12].mxu0 %vm864_vm6, %v1103_v29  ;;  %1987 = vmatmul.mubr.msk.bf16.vlgmr.msra.gmra.mrb[12].mxu1 %vm864_vm6, %v1104_v31 }
 0x2f9   : > { %1994 = vmatprep.mubr.msk.bf16.mxu0 %vm2278_vm5, %v2276_v38  ;;  %2002 = vmatprep.mubr.msk.bf16.mxu1 %vm2278_vm5, %v2276_v38 }
 0x2fa   : > { %1991 = vmatpush3.bf16.msra.mxu0 %v2153_v32  ;;  %1999 = vmatpush3.bf16.msra.mxu1 %v2154_v33 }
 0x2fb   : > { %1992 = vmatprep.subr.bf16.mxu0 %v2276_v38  ;;  %2000 = vmatprep.subr.bf16.mxu1 %v2276_v38 }
 0x2fe   : > { %1993 = vmatpush3.bf16.msra.mxu0 %v1362_v36  ;;  %2001 = vmatpush3.bf16.msra.mxu1 %v1417_v37 }
 0x2ff   : > { %2006 = vmatprep.subr.bf16.mxu0 %v2276_v38  ;;  %2014 = vmatprep.subr.bf16.mxu1 %v2276_v38 }
 0x3c3   : > { %v1154_v39 = vpop.f32.mrb[8].mxu0  ;;  %v1209_v40 = vpop.f32.mrb[8].mxu1 }
 0x3c4   : > { %1325 = vst.msk [vmem:[#allocation2] sm:$0x1] %vm1079_vm7, %v1154_v39  ;;  %v1964_v41 = vpop.f32.mrb[9].mxu0  ;;  %1326 = vst.msk [vmem:[#allocation2 + $0x1] sm:$0x1] %vm1079_vm7, %v1209_v40  ;;  %v1972_v43 = vpop.f32.mrb[9].mxu1 }
 0x3c5   : > { %v1157_v44 = vpop.f32.mrb[10].mxu0  ;;  %v1212_v45 = vpop.f32.mrb[10].mxu1 }
 0x3c6   : > { %v1965_v46 = vpop.f32.mrb[11].mxu0  ;;  %v1973_v47 = vpop.f32.mrb[11].mxu1 }
 0x3cb   : > { %v1264_v50 = vpop.f32.mrb[12].mxu0  ;;  %v1341_v51 = vld [vmem:[#allocation2] sm:$0x1]  ;;  %v1319_v53 = vpop.f32.mrb[12].mxu1  ;;  %v1342_v56 = vld [vmem:[#allocation2 + $0x1] sm:$0x1] }
 0x3cc   : > { %1327 = vst.msk [vmem:[#allocation2 + $0x2] sm:$0x1] %vm1079_vm7, %v1264_v50  ;;  %v1980_v54 = vpop.f32.mrb[13].mxu0  ;;  %v1345_v55 = vpack.c.bf16 %v1341_v51, %v1341_v51  ;;  %1328 = vst.msk [vmem:[#allocation2 + $0x3] sm:$0x1] %vm1079_vm7, %v1319_v53  ;;  %v1988_v58 = vpop.f32.mrb[13].mxu1  ;;  %v1346_v60 = vpack.c.bf16 %v1342_v56, %v1342_v56 }
 0x3cd   : > { %v1267_v59 = vpop.f32.mrb[14].mxu0  ;;  %v1322_v61 = vpop.f32.mrb[14].mxu1 }
 0x3ce   : > { %v1981_v62 = vpop.f32.mrb[15].mxu0  ;;  %1995 = vmatmul.mubr.msk.bf16.vlgmr.msra.gmra.mrb[16].mxu0 %vm864_vm6, %v1345_v55  ;;  %v1989_v63 = vpop.f32.mrb[15].mxu1  ;;  %2003 = vmatmul.mubr.msk.bf16.vlgmr.msra.gmra.mrb[16].mxu1 %vm864_vm6, %v1346_v60 }
 0x3cf   : > { %2007 = vmatpush3.bf16.msra.mxu0 %v2157_v48  ;;  %2015 = vmatpush3.bf16.msra.mxu1 %v2158_v57 }
 0x3d0   : > { %2008 = vmatprep.subr.bf16.mxu0 %v2276_v38  ;;  %2016 = vmatprep.subr.bf16.mxu1 %v2276_v38 }
 0x3d1   : > { %2010 = vmatprep.mubr.msk.bf16.mxu0 %vm2278_vm5, %v2276_v38  ;;  %2018 = vmatprep.mubr.msk.bf16.mxu1 %vm2278_vm5, %v2276_v38 }
 0x3d3   : > { %2009 = vmatpush3.bf16.msra.mxu0 %v1472_v0  ;;  %v1343_v2 = vld [vmem:[#allocation2 + $0x2] sm:$0x1]  ;;  %2017 = vmatpush3.bf16.msra.mxu1 %v1527_v1  ;;  %v1344_v4 = vld [vmem:[#allocation2 + $0x3] sm:$0x1] }
 0x3d4   : > { %v1347_v3 = vpack.c.bf16 %v1343_v2, %v1343_v2  ;;  %v1348_v5 = vpack.c.bf16 %v1344_v4, %v1344_v4 }
 0x3d6   : > { %2011 = vmatmul.mubr.msk.bf16.vlgmr.msra.gmra.mrb[20].mxu0 %vm864_vm6, %v1347_v3  ;;  %2019 = vmatmul.mubr.msk.bf16.vlgmr.msra.gmra.mrb[20].mxu1 %vm864_vm6, %v1348_v5 }
 0x4a1   : > { %v1398_v6 = vpop.f32.mrb[16].mxu0  ;;  %v1453_v42 = vpop.f32.mrb[16].mxu1 }
 0x4a2   : > { %1569 = vst.msk [vmem:[#allocation2] sm:$0x1] %vm1079_vm7, %v1398_v6  ;;  %v1996_v7 = vpop.f32.mrb[17].mxu0  ;;  %1570 = vst.msk [vmem:[#allocation2 + $0x1] sm:$0x1] %vm1079_vm7, %v1453_v42  ;;  %v2004_v8 = vpop.f32.mrb[17].mxu1 }
 0x4a3   : > { %v1401_v9 = vpop.f32.mrb[18].mxu0  ;;  %v1456_v38 = vpop.f32.mrb[18].mxu1 }
 0x4a4   : > { %v1997_v10 = vpop.f32.mrb[19].mxu0  ;;  %v2005_v11 = vpop.f32.mrb[19].mxu1 }
 0x4a9   : > { %v1508_v12 = vpop.f32.mrb[20].mxu0  ;;  %v1563_v13 = vpop.f32.mrb[20].mxu1 }
 0x4aa   : > { %1571 = vst.msk [vmem:[#allocation2 + $0x2] sm:$0x1] %vm1079_vm7, %v1508_v12  ;;  %v2012_v14 = vpop.f32.mrb[21].mxu0  ;;  %1572 = vst.msk [vmem:[#allocation2 + $0x3] sm:$0x1] %vm1079_vm7, %v1563_v13  ;;  %v2020_v15 = vpop.f32.mrb[21].mxu1 }
 0x4ab   : > { %v1511_v16 = vpop.f32.mrb[22].mxu0  ;;  %v1566_v17 = vpop.f32.mrb[22].mxu1 }
 0x4ac   : > { %v2013_v18 = vpop.f32.mrb[23].mxu0  ;;  %v2021_v20 = vpop.f32.mrb[23].mxu1 }
 0x4ad PF: > { %p1798_p5 = scmp.ne.s32.totalorder %s2255_s11, 1 }
 0x4ae   : > { %v1577_v21 = vld [vmem:[#allocation2] sm:$0x1] (!%p1798_p5)  ;;  %v1581_v22 = vlaneseq (!%p1798_p5)  ;;  %v1578_v23 = vld [vmem:[#allocation2 + $0x1] sm:$0x1] (!%p1798_p5)  ;;  %s2279_s9 = smov (!%p1798_p5), 127   ;;  %vm1600_vm11 = vcmask (!%p1798_p5), 122880  }
 0x4af   : > { %1576 = sbr.rel (%p1798_p5) target bundleno = 1325 (0x52d), region = 77 }
 0x4b0   : > { %vm1582_vm8 = vcmp.ge.s32.totalorder (!%p1798_p5), %v1581_v22, 1  ;;  %vm1583_vm9 = vcmp.lt.s32.totalorder (!%p1798_p5), %v1581_v22, 17  ;;  %v1594_v26 = vshrl.u32 (!%p1798_p5), %v1581_v22, 7 }
 0x4b1   : > { %v1579_v24 = vld [vmem:[#allocation2 + $0x2] sm:$0x1] (!%p1798_p5)  ;;  %v1580_v25 = vld [vmem:[#allocation2 + $0x3] sm:$0x1] (!%p1798_p5)  ;;  %vm1584_vm10 = vmand (!%p1798_p5), %vm1582_vm8, %vm1583_vm9 }
 0x4b2   : > { %v1585_v19 = vsel (!%p1798_p5), %vm1584_vm10, %v1577_v21, -inf  ;;  %v1586_v27 = vsel (!%p1798_p5), %vm1584_vm10, %v1578_v23, -inf  ;;  %v1587_v28 = vsel (!%p1798_p5), %vm1584_vm10, %v1579_v24, -inf  ;;  %v1588_v29 = vsel (!%p1798_p5), %vm1584_vm10, %v1580_v25, -inf }
 0x4b3   : > { %v1589_v30 = vmax.f32 (!%p1798_p5), %v1585_v19, %v1586_v27  ;;  %v1590_v31 = vmax.f32 (!%p1798_p5), %v1587_v28, %v1588_v29  ;;  %v1595_v32 = vsub.s32 (!%p1798_p5), 0, %v1594_v26 }
 0x4b5   : > { %v1591_v33 = vmax.f32 (!%p1798_p5), %v1589_v30, %v1590_v31 }
 0x4b7   : > { %v1596_v34 = vrot.slane %v1591_v33, %v1595_v32 }
 0x4b9   : > { %1597 = vrot.lane.b32.xlu0 %v1596_v34, %s2279_s9 }
 0x52b   : > { %v1598_v35 = vpop.permute.xlu0 %1597 }
 0x52c   : > { %1601 = vst.msk [vmem:[%s2441_s4] sm:$0x1] %vm1600_vm11, %v1598_v35 }
 0x52d PF: > { %s1799_s11 = sshll.u32 %s2259_s12, 4  ;;  %s1615_s17 = sshll.u32 %s2441_s4, 4  ;;  %s1616_s17 = int_to_ptr.vmem [resolvable:$true] %s1615_s17 }
 0x52e   : > { %s2643_s21 = scalar_lea.hbm %s2700_s1, %s1799_s11  ;;  %s1603_s22 = scalar_lea.sflag [#allocation5], %s314_s26 }
 0x52f   : > { %s2161_s23 = scalar_lea.vmem %s1616_s17, 16  ;;  %s2280_s25 = smov [#allocation4]  }
 0x530   : > { %p2162_p6 = scmp.ne.s32.totalorder %s1616_s17, %s2161_s23  ;;  %s2165_s20 = sshll.u32 %s2280_s25, 4  ;;  %s2166_s20 = int_to_ptr.vmem [resolvable:$false] %s2165_s20 }
 0x531   : > { %s2167_s24 = scalar_lea.vmem %s2166_s20, 32  ;;  %p2168_p9 = scmp.lt.s32.totalorder %s1616_s17, %s2166_s20 }
 0x532   : > { %p2163_p7 = pnand %p2162_p6, %p2369_p10  ;;  %p2169_p11 = scmp.lt.s32.totalorder %s2167_s24, %s2161_s23 }
 0x534   : > { %p2164_p8 = pneg %p2163_p7  ;;  %p2170_p13 = por %p2169_p11, %p2168_p9 }
 0x536   : > { %p2171_p0 = pnand %p2170_p13, %p2164_p8 }
 0x538   : > { %2174 = shalt.err (!%p2171_p0)
}
 0x539   : > { %s2175_s12 = scalar_lea.hbm %s2643_s21, 16  ;;  %s2179_s3 = scalar_lea.hbm %s2700_s1, 128 }
 0x53a   : > { %p2176_p1 = scmp.ne.s32.totalorder %s2643_s21, %s2175_s12  ;;  %p2180_p4 = scmp.lt.u32.totalorder %s2643_s21, %s2700_s1 }
 0x53b   : > { %p2181_p5 = scmp.lt.u32.totalorder %s2179_s3, %s2175_s12  ;;  %p2183_p7 = scmp.lt.u32.totalorder %s2175_s12, %s2643_s21 }
 0x53c   : > { %p2177_p2 = pnand %p2176_p1, %p2369_p10 }
 0x53d   : > { %p2182_p6 = por %p2181_p5, %p2180_p4 }
 0x53e   : > { %p2178_p3 = pneg %p2177_p2 }
 0x53f   : > { %p2184_p8 = por %p2183_p7, %p2182_p6 }
 0x541   : > { %p2185_p9 = pnand %p2184_p8, %p2178_p3 }
 0x543   : > { %2188 = shalt.err (!%p2185_p9)
}
 0x544   : > { %2026 = dma.vmem_to_hbm [thread:$0]  (%p2369_p10), %s1616_s17, 16, %s2643_s21, %s1603_s22  }
 0x545 PF: > { %p2033_p11 = scmp.ge.s32.totalorder %s2271_s15, 2  ;;  %s1627_s11 = sand.u32 1, %s2235_s6  }
 0x546   : > { %s1628_s5 = scalar_lea.sflag [#allocation5], %s1627_s11 }
 0x547   : > { %p2029_p13 = pnand %p2033_p11, %p2379_p12 }
 0x549   : > { %2230 = dma.done.wait (!%p2029_p13), %s1628_s5, 16  }
 0x54a   : > { %2232 = vsyncadd (!%p2029_p13), %s1628_s5, 4294967280  ;;  %s14_s15 = sadd.s32 1, %s2271_s15   ;;  %s2704_s6 = smov %s2239_s7 }
 0x54b   : > { %p11_p0 = scmp.ge.s32.totalorder %s14_s15, 18   ;;  %s2705_s7 = smov %s2243_s8 }
 0x54c   : > { %s2706_s8 = smov %s2374_s29  ;;  %s2707_s9 = smov %s2251_s10 }
 0x54d   : > { %s2708_s10 = smov %s2377_s30  ;;  %s2709_s11 = smov %s2263_s13 }
 0x54e   : > { %s2710_s12 = smov %s2267_s14  ;;  %s2711_s13 = smov %s2714_s18 }
 0x54f   : > { %s2712_s14 = smov %s2718_s19  ;;  %13 = sbr.rel (!%p11_p0) target bundleno = 6 (0x6), region = 121 }
 0x556   :  { %1632 = vsyncpa [#allocation5], 1 }
 0x557   :  { %1634 = vsyncpa [#allocation5 + $0x1], 1 }

</bundles_post_ra>
